<compile_context>
chip_gen: v6e
topology: v6e:2x2x1
jax: 0.10.0
libtpu: 0.0.40
codegen_flags: <defaults>
</compile_context>

<pallas_src>
import jax
import jax.numpy as jnp
from jax import lax
from jax.experimental import pallas as pl
from jax.experimental.pallas import tpu as pltpu

LANE = 128


def _round_up(x, m):
    return (x + m - 1) // m * m


# ---------------------------------------------------------------------------
# Fused conv (+ folded BN / bias) + ReLU + MaxPool kernel (one whole image
# plane per grid step).
# ---------------------------------------------------------------------------

def _make_kernel(k, ph, pw, Ho, Wc, Wo, use_fma):
    """Kernel refs:
         x     : (Hp, Wp, Cin_p)  bf16   padded input plane (one image)
         w     : (k*k, Cin_p, Cout_p) bf16, per-channel scale pre-folded
         shift : (1, Cout_p) f32         bias / folded-BN shift
         out   : (Ho, Wo, Cout_p) bf16   pooled output plane
         pool  : (Wc, Cout_p) f32        scratch (only when pw > 1)
    """
    R = ph + k - 1  # input rows touched per pooled output row

    def kernel(*refs):
        if pw > 1:
            x_ref, w_ref, s_ref, o_ref, pool_ref = refs
        else:
            x_ref, w_ref, s_ref, o_ref = refs
        shift = s_ref[...]                                  # (1, Cout_p) f32

        def row_body(ho, carry):
            # Load each needed input row exactly once (VMEM -> vregs).
            rows = [x_ref[ph * ho + t] for t in range(R)]   # (Wp, Cin_p) each

            rowmax = None
            for r in range(ph):                             # conv rows in pool window
                acc = None
                for di in range(k):
                    row = rows[r + di]
                    for dj in range(k):
                        xs = row[dj:dj + Wc, :]             # (Wc, Cin_p) contiguous
                        wt = w_ref[di * k + dj]             # (Cin_p, Cout_p)
                        if use_fma:                         # tiny Cin: VPU FMA
                            term = None
                            for c in range(xs.shape[-1]):
                                t2 = (xs[:, c:c + 1].astype(jnp.float32)
                                      * wt[c:c + 1, :].astype(jnp.float32))
                                term = t2 if term is None else term + t2
                        else:                               # MXU, f32 accumulate
                            term = jnp.dot(xs, wt,
                                           preferred_element_type=jnp.float32)
                        acc = term if acc is None else acc + term
                rowmax = acc if rowmax is None else jnp.maximum(rowmax, acc)

            # Width pooling in the epilogue (strided reads of a VMEM scratch).
            if pw > 1:
                pool_ref[...] = rowmax                      # (Wc, Cout_p) f32
                pooled = pool_ref[pl.ds(0, Wo, pw), :]
                for j in range(1, pw):
                    pooled = jnp.maximum(pooled, pool_ref[pl.ds(j, Wo, pw), :])
            else:
                pooled = rowmax                             # Wo == Wc

            # Epilogue: folded-BN/bias shift + ReLU, once per pooled row.
            o_ref[ho] = jnp.maximum(pooled + shift, 0.0).astype(o_ref.dtype)
            return carry

        lax.fori_loop(0, Ho, row_body, 0)

    return kernel


def conv_relu_pool(x, w, shift, *, k, pad, pool):
    """x: (N,H,W,Cin_p) bf16; w: (k*k,Cin_p,Cout_p) bf16; shift: (1,Cout_p) f32."""
    ph, pw = pool
    if pad > 0:
        x = jnp.pad(x, ((0, 0), (pad, pad), (pad, pad), (0, 0)))
    N, Hp, Wp, cin_p = x.shape
    kk, cin_w, cout_p = w.shape
    assert kk == k * k and cin_w == cin_p
    Hc, Wc = Hp - k + 1, Wp - k + 1           # conv output size (stride 1)
    Ho, Wo = Hc // ph, Wc // pw               # pooled output size (floor, as torch)
    use_fma = cin_p < 8                       # layer 0 (raw Cin) -> VPU FMA path

    scratch = [pltpu.VMEM((Wc, cout_p), jnp.float32)] if pw > 1 else []

    return pl.pallas_call(
        _make_kernel(k, ph, pw, Ho, Wc, Wo, use_fma),
        out_shape=jax.ShapeDtypeStruct((N, Ho, Wo, cout_p), jnp.bfloat16),
        grid=(N,),
        in_specs=[
            pl.BlockSpec((None, Hp, Wp, cin_p), lambda n: (n, 0, 0, 0)),
            pl.BlockSpec((kk, cin_p, cout_p), lambda n: (0, 0, 0)),
            pl.BlockSpec((1, cout_p), lambda n: (0, 0)),
        ],
        out_specs=pl.BlockSpec((None, Ho, Wo, cout_p), lambda n: (n, 0, 0, 0)),
        scratch_shapes=scratch,
        compiler_params=pltpu.CompilerParams(
            dimension_semantics=("parallel",),
            vmem_limit_bytes=32 * 1024 * 1024),
    )(x, w, shift)


# ---------------------------------------------------------------------------
# Parameter construction (deterministic, synthetic; BN folded, scale folded)
# ---------------------------------------------------------------------------

def init_params(key, input_channel, output_channel):
    oc = [output_channel // 8, output_channel // 4,
          output_channel // 2, output_channel]
    # (cin, cout, kernel, pad, pool(ph,pw), has_bn)
    cfg = [
        (input_channel, oc[0], 3, 1, (2, 2), False),
        (oc[0],         oc[1], 3, 1, (2, 2), False),
        (oc[1],         oc[2], 3, 1, (1, 1), False),
        (oc[2],         oc[2], 3, 1, (2, 1), False),
        (oc[2],         oc[3], 3, 1, (1, 1), True),
        (oc[3],         oc[3], 3, 1, (2, 1), True),
        (oc[3],         oc[3], 2, 0, (1, 1), False),
    ]
    params = []
    for li, (cin, cout, k, pad, pool, has_bn) in enumerate(cfg):
        key, kw_, kb_, kg_, kbe_, km_, kv_ = jax.random.split(key, 7)
        fan_in = cin * k * k
        w = jax.random.normal(kw_, (k, k, cin, cout), jnp.float32) / jnp.sqrt(fan_in)
        if has_bn:
            # Inference-mode BatchNorm folded into per-channel scale/shift.
            gamma = 1.0 + 0.1 * jax.random.normal(kg_, (cout,), jnp.float32)
            beta = 0.1 * jax.random.normal(kbe_, (cout,), jnp.float32)
            rmean = 0.05 * jax.random.normal(km_, (cout,), jnp.float32)
            rvar = 1.0 + 0.1 * jax.random.uniform(kv_, (cout,), jnp.float32)
            eps = 1e-5
            scale = gamma / jnp.sqrt(rvar + eps)
            shift = beta - rmean * scale
        else:
            bias = 0.05 * jax.random.normal(kb_, (cout,), jnp.float32)
            scale = jnp.ones((cout,), jnp.float32)
            shift = bias
        # Fold per-channel scale into the weights (epilogue = add + ReLU only).
        w = w * scale[None, None, None, :]
        # Layer 0 keeps its raw (tiny) Cin; later layers use the lane-padded
        # channel count of the previous layer's output.
        cin_p = cin if li == 0 else _round_up(cin, LANE)
        cout_p = _round_up(cout, LANE)
        w_p = jnp.zeros((k, k, cin_p, cout_p), jnp.float32)
        w_p = w_p.at[:, :, :cin, :cout].set(w)
        w_p = w_p.reshape(k * k, cin_p, cout_p).astype(jnp.bfloat16)
        shift_p = jnp.zeros((1, cout_p), jnp.float32).at[0, :cout].set(shift)
        params.append(dict(w=w_p, shift=shift_p, k=k, pad=pad, pool=pool,
                           cout=cout))
    return params


# ---------------------------------------------------------------------------
# Full forward pass (mirrors VGG_FeatureExtractor.ConvNet)
# ---------------------------------------------------------------------------

def vgg_feature_extractor(x_nchw, params):
    # NCHW (PyTorch) -> NHWC bf16.  Layer-0 Cin stays unpadded (the 1 -> 128
    # pad would inflate layer-0 HBM traffic 128x for nothing).
    x = jnp.transpose(x_nchw, (0, 2, 3, 1)).astype(jnp.bfloat16)

    for p in params:
        x = conv_relu_pool(x, p["w"], p["shift"],
                           k=p["k"], pad=p["pad"], pool=p["pool"])

    # Drop channel padding, back to NCHW f32 (PyTorch convention).
    x = x[:, :, :, :params[-1]["cout"]]
    return jnp.transpose(x, (0, 3, 1, 2)).astype(jnp.float32)


# ---------------------------------------------------------------------------
# Main
# ---------------------------------------------------------------------------

if __name__ == "__main__":
    key = jax.random.PRNGKey(0)
    k_x, k_p = jax.random.split(key)

    # Small CRNN-style input: batch=2, grayscale, H=32 (needed for the 4 height
    # halvings + final 2x2 valid conv), W=16.  output_channel=64 -> [8,16,32,64].
    batch, in_ch, H, W = 2, 1, 32, 16
    output_channel = 64

    x = jax.random.normal(k_x, (batch, in_ch, H, W), jnp.float32)
    params = init_params(k_p, in_ch, output_channel)

    out = vgg_feature_extractor(x, params)
    out = jax.block_until_ready(out)

    expected = (batch, output_channel, 1, (W // 4) - 1)  # (2, 64, 1, 3)
    assert out.shape == expected, (out.shape, expected)
    assert bool(jnp.all(jnp.isfinite(out)))

    print("KERNEL_OK")
</pallas_src>

<mosaic_0001>
module attributes {stable_mosaic.version = 11 : i64} {
  func.func @kernel(%arg0: i32, %arg1: memref<1x34x18x1xbf16, #tpu.memory_space<vmem>>, %arg2: memref<9x1x128xbf16, #tpu.memory_space<vmem>>, %arg3: memref<1x128xf32, #tpu.memory_space<vmem>>, %arg4: memref<1x16x8x128xbf16, #tpu.memory_space<vmem>>, %arg5: memref<16x128xf32, #tpu.memory_space<vmem>>) attributes {dimension_semantics = [#tpu.dimension_semantics<parallel>], iteration_bounds = array<i64: 2>, scalar_prefetch = 0 : i64, scratch_operands = 1 : i64, tpu.core_type = #tpu.core_type<tc>, window_params = [{transform_indices = @transform_0, window_bounds = array<i64: 1, 34, 18, 1>}, {pipeline_mode = #tpu.pipeline_mode<synchronous>, transform_indices = @transform_1, window_bounds = array<i64: 9, 1, 128>}, {pipeline_mode = #tpu.pipeline_mode<synchronous>, transform_indices = @transform_2, window_bounds = array<i64: 1, 128>}, {transform_indices = @transform_3, window_bounds = array<i64: 1, 16, 8, 128>}]} {
    %c0 = arith.constant 0 : index
    %c0_0 = arith.constant 0 : index
    %0 = vector.load %arg3[%c0, %c0_0] : memref<1x128xf32, #tpu.memory_space<vmem>>, vector<1x128xf32>
    %c0_i32 = arith.constant 0 : i32
    %c16_i32 = arith.constant 16 : i32
    %1 = arith.addi %c0_i32, %c16_i32 : i32
    %c1_i32 = arith.constant 1 : i32
    scf.for %arg6 = %c0_i32 to %1 step %c1_i32  : i32 {
      %c2_i32 = arith.constant 2 : i32
      %2 = arith.muli %c2_i32, %arg6 : i32
      %c0_i32_2 = arith.constant 0 : i32
      %3 = arith.addi %2, %c0_i32_2 : i32
      %c0_3 = arith.constant 0 : index
      %4 = arith.index_cast %3 : i32 to index
      %c0_4 = arith.constant 0 : index
      %c0_5 = arith.constant 0 : index
      %5 = vector.load %arg1[%c0_3, %4, %c0_4, %c0_5] : memref<1x34x18x1xbf16, #tpu.memory_space<vmem>>, vector<1x1x18x1xbf16>
      %6 = vector.shape_cast %5 : vector<1x1x18x1xbf16> to vector<18x1xbf16>
      %c2_i32_6 = arith.constant 2 : i32
      %7 = arith.muli %c2_i32_6, %arg6 : i32
      %c1_i32_7 = arith.constant 1 : i32
      %8 = arith.addi %7, %c1_i32_7 : i32
      %c0_8 = arith.constant 0 : index
      %9 = arith.index_cast %8 : i32 to index
      %c0_9 = arith.constant 0 : index
      %c0_10 = arith.constant 0 : index
      %10 = vector.load %arg1[%c0_8, %9, %c0_9, %c0_10] : memref<1x34x18x1xbf16, #tpu.memory_space<vmem>>, vector<1x1x18x1xbf16>
      %11 = vector.shape_cast %10 : vector<1x1x18x1xbf16> to vector<18x1xbf16>
      %c2_i32_11 = arith.constant 2 : i32
      %12 = arith.muli %c2_i32_11, %arg6 : i32
      %c2_i32_12 = arith.constant 2 : i32
      %13 = arith.addi %12, %c2_i32_12 : i32
      %c0_13 = arith.constant 0 : index
      %14 = arith.index_cast %13 : i32 to index
      %c0_14 = arith.constant 0 : index
      %c0_15 = arith.constant 0 : index
      %15 = vector.load %arg1[%c0_13, %14, %c0_14, %c0_15] : memref<1x34x18x1xbf16, #tpu.memory_space<vmem>>, vector<1x1x18x1xbf16>
      %16 = vector.shape_cast %15 : vector<1x1x18x1xbf16> to vector<18x1xbf16>
      %c2_i32_16 = arith.constant 2 : i32
      %17 = arith.muli %c2_i32_16, %arg6 : i32
      %c3_i32 = arith.constant 3 : i32
      %18 = arith.addi %17, %c3_i32 : i32
      %c0_17 = arith.constant 0 : index
      %19 = arith.index_cast %18 : i32 to index
      %c0_18 = arith.constant 0 : index
      %c0_19 = arith.constant 0 : index
      %20 = vector.load %arg1[%c0_17, %19, %c0_18, %c0_19] : memref<1x34x18x1xbf16, #tpu.memory_space<vmem>>, vector<1x1x18x1xbf16>
      %21 = vector.shape_cast %20 : vector<1x1x18x1xbf16> to vector<18x1xbf16>
      %22 = vector.extract_strided_slice %6 {offsets = [0, 0], sizes = [16, 1], strides = [1, 1]} : vector<18x1xbf16> to vector<16x1xbf16>
      %c0_20 = arith.constant 0 : index
      %c0_21 = arith.constant 0 : index
      %c0_22 = arith.constant 0 : index
      %23 = vector.load %arg2[%c0_20, %c0_21, %c0_22] : memref<9x1x128xbf16, #tpu.memory_space<vmem>>, vector<1x1x128xbf16>
      %24 = vector.shape_cast %23 : vector<1x1x128xbf16> to vector<1x128xbf16>
      %25 = arith.extf %22 : vector<16x1xbf16> to vector<16x1xf32>
      %26 = arith.extf %24 : vector<1x128xbf16> to vector<1x128xf32>
      %27 = vector.broadcast %25 : vector<16x1xf32> to vector<16x128xf32>
      %28 = vector.broadcast %26 : vector<1x128xf32> to vector<16x128xf32>
      %29 = arith.mulf %27, %28 : vector<16x128xf32>
      %30 = vector.extract_strided_slice %6 {offsets = [1, 0], sizes = [16, 1], strides = [1, 1]} : vector<18x1xbf16> to vector<16x1xbf16>
      %c1 = arith.constant 1 : index
      %c0_23 = arith.constant 0 : index
      %c0_24 = arith.constant 0 : index
      %31 = vector.load %arg2[%c1, %c0_23, %c0_24] : memref<9x1x128xbf16, #tpu.memory_space<vmem>>, vector<1x1x128xbf16>
      %32 = vector.shape_cast %31 : vector<1x1x128xbf16> to vector<1x128xbf16>
      %33 = arith.extf %30 : vector<16x1xbf16> to vector<16x1xf32>
      %34 = arith.extf %32 : vector<1x128xbf16> to vector<1x128xf32>
      %35 = vector.broadcast %33 : vector<16x1xf32> to vector<16x128xf32>
      %36 = vector.broadcast %34 : vector<1x128xf32> to vector<16x128xf32>
      %37 = arith.mulf %35, %36 : vector<16x128xf32>
      %38 = arith.addf %29, %37 : vector<16x128xf32>
      %39 = vector.extract_strided_slice %6 {offsets = [2, 0], sizes = [16, 1], strides = [1, 1]} : vector<18x1xbf16> to vector<16x1xbf16>
      %c2 = arith.constant 2 : index
      %c0_25 = arith.constant 0 : index
      %c0_26 = arith.constant 0 : index
      %40 = vector.load %arg2[%c2, %c0_25, %c0_26] : memref<9x1x128xbf16, #tpu.memory_space<vmem>>, vector<1x1x128xbf16>
      %41 = vector.shape_cast %40 : vector<1x1x128xbf16> to vector<1x128xbf16>
      %42 = arith.extf %39 : vector<16x1xbf16> to vector<16x1xf32>
      %43 = arith.extf %41 : vector<1x128xbf16> to vector<1x128xf32>
      %44 = vector.broadcast %42 : vector<16x1xf32> to vector<16x128xf32>
      %45 = vector.broadcast %43 : vector<1x128xf32> to vector<16x128xf32>
      %46 = arith.mulf %44, %45 : vector<16x128xf32>
      %47 = arith.addf %38, %46 : vector<16x128xf32>
      %48 = vector.extract_strided_slice %11 {offsets = [0, 0], sizes = [16, 1], strides = [1, 1]} : vector<18x1xbf16> to vector<16x1xbf16>
      %c3 = arith.constant 3 : index
      %c0_27 = arith.constant 0 : index
      %c0_28 = arith.constant 0 : index
      %49 = vector.load %arg2[%c3, %c0_27, %c0_28] : memref<9x1x128xbf16, #tpu.memory_space<vmem>>, vector<1x1x128xbf16>
      %50 = vector.shape_cast %49 : vector<1x1x128xbf16> to vector<1x128xbf16>
      %51 = arith.extf %48 : vector<16x1xbf16> to vector<16x1xf32>
      %52 = arith.extf %50 : vector<1x128xbf16> to vector<1x128xf32>
      %53 = vector.broadcast %51 : vector<16x1xf32> to vector<16x128xf32>
      %54 = vector.broadcast %52 : vector<1x128xf32> to vector<16x128xf32>
      %55 = arith.mulf %53, %54 : vector<16x128xf32>
      %56 = arith.addf %47, %55 : vector<16x128xf32>
      %57 = vector.extract_strided_slice %11 {offsets = [1, 0], sizes = [16, 1], strides = [1, 1]} : vector<18x1xbf16> to vector<16x1xbf16>
      %c4 = arith.constant 4 : index
      %c0_29 = arith.constant 0 : index
      %c0_30 = arith.constant 0 : index
      %58 = vector.load %arg2[%c4, %c0_29, %c0_30] : memref<9x1x128xbf16, #tpu.memory_space<vmem>>, vector<1x1x128xbf16>
      %59 = vector.shape_cast %58 : vector<1x1x128xbf16> to vector<1x128xbf16>
      %60 = arith.extf %57 : vector<16x1xbf16> to vector<16x1xf32>
      %61 = arith.extf %59 : vector<1x128xbf16> to vector<1x128xf32>
      %62 = vector.broadcast %60 : vector<16x1xf32> to vector<16x128xf32>
      %63 = vector.broadcast %61 : vector<1x128xf32> to vector<16x128xf32>
      %64 = arith.mulf %62, %63 : vector<16x128xf32>
      %65 = arith.addf %56, %64 : vector<16x128xf32>
      %66 = vector.extract_strided_slice %11 {offsets = [2, 0], sizes = [16, 1], strides = [1, 1]} : vector<18x1xbf16> to vector<16x1xbf16>
      %c5 = arith.constant 5 : index
      %c0_31 = arith.constant 0 : index
      %c0_32 = arith.constant 0 : index
      %67 = vector.load %arg2[%c5, %c0_31, %c0_32] : memref<9x1x128xbf16, #tpu.memory_space<vmem>>, vector<1x1x128xbf16>
      %68 = vector.shape_cast %67 : vector<1x1x128xbf16> to vector<1x128xbf16>
      %69 = arith.extf %66 : vector<16x1xbf16> to vector<16x1xf32>
      %70 = arith.extf %68 : vector<1x128xbf16> to vector<1x128xf32>
      %71 = vector.broadcast %69 : vector<16x1xf32> to vector<16x128xf32>
      %72 = vector.broadcast %70 : vector<1x128xf32> to vector<16x128xf32>
      %73 = arith.mulf %71, %72 : vector<16x128xf32>
      %74 = arith.addf %65, %73 : vector<16x128xf32>
      %75 = vector.extract_strided_slice %16 {offsets = [0, 0], sizes = [16, 1], strides = [1, 1]} : vector<18x1xbf16> to vector<16x1xbf16>
      %c6 = arith.constant 6 : index
      %c0_33 = arith.constant 0 : index
      %c0_34 = arith.constant 0 : index
      %76 = vector.load %arg2[%c6, %c0_33, %c0_34] : memref<9x1x128xbf16, #tpu.memory_space<vmem>>, vector<1x1x128xbf16>
      %77 = vector.shape_cast %76 : vector<1x1x128xbf16> to vector<1x128xbf16>
      %78 = arith.extf %75 : vector<16x1xbf16> to vector<16x1xf32>
      %79 = arith.extf %77 : vector<1x128xbf16> to vector<1x128xf32>
      %80 = vector.broadcast %78 : vector<16x1xf32> to vector<16x128xf32>
      %81 = vector.broadcast %79 : vector<1x128xf32> to vector<16x128xf32>
      %82 = arith.mulf %80, %81 : vector<16x128xf32>
      %83 = arith.addf %74, %82 : vector<16x128xf32>
      %84 = vector.extract_strided_slice %16 {offsets = [1, 0], sizes = [16, 1], strides = [1, 1]} : vector<18x1xbf16> to vector<16x1xbf16>
      %c7 = arith.constant 7 : index
      %c0_35 = arith.constant 0 : index
      %c0_36 = arith.constant 0 : index
      %85 = vector.load %arg2[%c7, %c0_35, %c0_36] : memref<9x1x128xbf16, #tpu.memory_space<vmem>>, vector<1x1x128xbf16>
      %86 = vector.shape_cast %85 : vector<1x1x128xbf16> to vector<1x128xbf16>
      %87 = arith.extf %84 : vector<16x1xbf16> to vector<16x1xf32>
      %88 = arith.extf %86 : vector<1x128xbf16> to vector<1x128xf32>
      %89 = vector.broadcast %87 : vector<16x1xf32> to vector<16x128xf32>
      %90 = vector.broadcast %88 : vector<1x128xf32> to vector<16x128xf32>
      %91 = arith.mulf %89, %90 : vector<16x128xf32>
      %92 = arith.addf %83, %91 : vector<16x128xf32>
      %93 = vector.extract_strided_slice %16 {offsets = [2, 0], sizes = [16, 1], strides = [1, 1]} : vector<18x1xbf16> to vector<16x1xbf16>
      %c8 = arith.constant 8 : index
      %c0_37 = arith.constant 0 : index
      %c0_38 = arith.constant 0 : index
      %94 = vector.load %arg2[%c8, %c0_37, %c0_38] : memref<9x1x128xbf16, #tpu.memory_space<vmem>>, vector<1x1x128xbf16>
      %95 = vector.shape_cast %94 : vector<1x1x128xbf16> to vector<1x128xbf16>
      %96 = arith.extf %93 : vector<16x1xbf16> to vector<16x1xf32>
      %97 = arith.extf %95 : vector<1x128xbf16> to vector<1x128xf32>
      %98 = vector.broadcast %96 : vector<16x1xf32> to vector<16x128xf32>
      %99 = vector.broadcast %97 : vector<1x128xf32> to vector<16x128xf32>
      %100 = arith.mulf %98, %99 : vector<16x128xf32>
      %101 = arith.addf %92, %100 : vector<16x128xf32>
      %102 = vector.extract_strided_slice %11 {offsets = [0, 0], sizes = [16, 1], strides = [1, 1]} : vector<18x1xbf16> to vector<16x1xbf16>
      %c0_39 = arith.constant 0 : index
      %c0_40 = arith.constant 0 : index
      %c0_41 = arith.constant 0 : index
      %103 = vector.load %arg2[%c0_39, %c0_40, %c0_41] : memref<9x1x128xbf16, #tpu.memory_space<vmem>>, vector<1x1x128xbf16>
      %104 = vector.shape_cast %103 : vector<1x1x128xbf16> to vector<1x128xbf16>
      %105 = arith.extf %102 : vector<16x1xbf16> to vector<16x1xf32>
      %106 = arith.extf %104 : vector<1x128xbf16> to vector<1x128xf32>
      %107 = vector.broadcast %105 : vector<16x1xf32> to vector<16x128xf32>
      %108 = vector.broadcast %106 : vector<1x128xf32> to vector<16x128xf32>
      %109 = arith.mulf %107, %108 : vector<16x128xf32>
      %110 = vector.extract_strided_slice %11 {offsets = [1, 0], sizes = [16, 1], strides = [1, 1]} : vector<18x1xbf16> to vector<16x1xbf16>
      %c1_42 = arith.constant 1 : index
      %c0_43 = arith.constant 0 : index
      %c0_44 = arith.constant 0 : index
      %111 = vector.load %arg2[%c1_42, %c0_43, %c0_44] : memref<9x1x128xbf16, #tpu.memory_space<vmem>>, vector<1x1x128xbf16>
      %112 = vector.shape_cast %111 : vector<1x1x128xbf16> to vector<1x128xbf16>
      %113 = arith.extf %110 : vector<16x1xbf16> to vector<16x1xf32>
      %114 = arith.extf %112 : vector<1x128xbf16> to vector<1x128xf32>
      %115 = vector.broadcast %113 : vector<16x1xf32> to vector<16x128xf32>
      %116 = vector.broadcast %114 : vector<1x128xf32> to vector<16x128xf32>
      %117 = arith.mulf %115, %116 : vector<16x128xf32>
      %118 = arith.addf %109, %117 : vector<16x128xf32>
      %119 = vector.extract_strided_slice %11 {offsets = [2, 0], sizes = [16, 1], strides = [1, 1]} : vector<18x1xbf16> to vector<16x1xbf16>
      %c2_45 = arith.constant 2 : index
      %c0_46 = arith.constant 0 : index
      %c0_47 = arith.constant 0 : index
      %120 = vector.load %arg2[%c2_45, %c0_46, %c0_47] : memref<9x1x128xbf16, #tpu.memory_space<vmem>>, vector<1x1x128xbf16>
      %121 = vector.shape_cast %120 : vector<1x1x128xbf16> to vector<1x128xbf16>
      %122 = arith.extf %119 : vector<16x1xbf16> to vector<16x1xf32>
      %123 = arith.extf %121 : vector<1x128xbf16> to vector<1x128xf32>
      %124 = vector.broadcast %122 : vector<16x1xf32> to vector<16x128xf32>
      %125 = vector.broadcast %123 : vector<1x128xf32> to vector<16x128xf32>
      %126 = arith.mulf %124, %125 : vector<16x128xf32>
      %127 = arith.addf %118, %126 : vector<16x128xf32>
      %128 = vector.extract_strided_slice %16 {offsets = [0, 0], sizes = [16, 1], strides = [1, 1]} : vector<18x1xbf16> to vector<16x1xbf16>
      %c3_48 = arith.constant 3 : index
      %c0_49 = arith.constant 0 : index
      %c0_50 = arith.constant 0 : index
      %129 = vector.load %arg2[%c3_48, %c0_49, %c0_50] : memref<9x1x128xbf16, #tpu.memory_space<vmem>>, vector<1x1x128xbf16>
      %130 = vector.shape_cast %129 : vector<1x1x128xbf16> to vector<1x128xbf16>
      %131 = arith.extf %128 : vector<16x1xbf16> to vector<16x1xf32>
      %132 = arith.extf %130 : vector<1x128xbf16> to vector<1x128xf32>
      %133 = vector.broadcast %131 : vector<16x1xf32> to vector<16x128xf32>
      %134 = vector.broadcast %132 : vector<1x128xf32> to vector<16x128xf32>
      %135 = arith.mulf %133, %134 : vector<16x128xf32>
      %136 = arith.addf %127, %135 : vector<16x128xf32>
      %137 = vector.extract_strided_slice %16 {offsets = [1, 0], sizes = [16, 1], strides = [1, 1]} : vector<18x1xbf16> to vector<16x1xbf16>
      %c4_51 = arith.constant 4 : index
      %c0_52 = arith.constant 0 : index
      %c0_53 = arith.constant 0 : index
      %138 = vector.load %arg2[%c4_51, %c0_52, %c0_53] : memref<9x1x128xbf16, #tpu.memory_space<vmem>>, vector<1x1x128xbf16>
      %139 = vector.shape_cast %138 : vector<1x1x128xbf16> to vector<1x128xbf16>
      %140 = arith.extf %137 : vector<16x1xbf16> to vector<16x1xf32>
      %141 = arith.extf %139 : vector<1x128xbf16> to vector<1x128xf32>
      %142 = vector.broadcast %140 : vector<16x1xf32> to vector<16x128xf32>
      %143 = vector.broadcast %141 : vector<1x128xf32> to vector<16x128xf32>
      %144 = arith.mulf %142, %143 : vector<16x128xf32>
      %145 = arith.addf %136, %144 : vector<16x128xf32>
      %146 = vector.extract_strided_slice %16 {offsets = [2, 0], sizes = [16, 1], strides = [1, 1]} : vector<18x1xbf16> to vector<16x1xbf16>
      %c5_54 = arith.constant 5 : index
      %c0_55 = arith.constant 0 : index
      %c0_56 = arith.constant 0 : index
      %147 = vector.load %arg2[%c5_54, %c0_55, %c0_56] : memref<9x1x128xbf16, #tpu.memory_space<vmem>>, vector<1x1x128xbf16>
      %148 = vector.shape_cast %147 : vector<1x1x128xbf16> to vector<1x128xbf16>
      %149 = arith.extf %146 : vector<16x1xbf16> to vector<16x1xf32>
      %150 = arith.extf %148 : vector<1x128xbf16> to vector<1x128xf32>
      %151 = vector.broadcast %149 : vector<16x1xf32> to vector<16x128xf32>
      %152 = vector.broadcast %150 : vector<1x128xf32> to vector<16x128xf32>
      %153 = arith.mulf %151, %152 : vector<16x128xf32>
      %154 = arith.addf %145, %153 : vector<16x128xf32>
      %155 = vector.extract_strided_slice %21 {offsets = [0, 0], sizes = [16, 1], strides = [1, 1]} : vector<18x1xbf16> to vector<16x1xbf16>
      %c6_57 = arith.constant 6 : index
      %c0_58 = arith.constant 0 : index
      %c0_59 = arith.constant 0 : index
      %156 = vector.load %arg2[%c6_57, %c0_58, %c0_59] : memref<9x1x128xbf16, #tpu.memory_space<vmem>>, vector<1x1x128xbf16>
      %157 = vector.shape_cast %156 : vector<1x1x128xbf16> to vector<1x128xbf16>
      %158 = arith.extf %155 : vector<16x1xbf16> to vector<16x1xf32>
      %159 = arith.extf %157 : vector<1x128xbf16> to vector<1x128xf32>
      %160 = vector.broadcast %158 : vector<16x1xf32> to vector<16x128xf32>
      %161 = vector.broadcast %159 : vector<1x128xf32> to vector<16x128xf32>
      %162 = arith.mulf %160, %161 : vector<16x128xf32>
      %163 = arith.addf %154, %162 : vector<16x128xf32>
      %164 = vector.extract_strided_slice %21 {offsets = [1, 0], sizes = [16, 1], strides = [1, 1]} : vector<18x1xbf16> to vector<16x1xbf16>
      %c7_60 = arith.constant 7 : index
      %c0_61 = arith.constant 0 : index
      %c0_62 = arith.constant 0 : index
      %165 = vector.load %arg2[%c7_60, %c0_61, %c0_62] : memref<9x1x128xbf16, #tpu.memory_space<vmem>>, vector<1x1x128xbf16>
      %166 = vector.shape_cast %165 : vector<1x1x128xbf16> to vector<1x128xbf16>
      %167 = arith.extf %164 : vector<16x1xbf16> to vector<16x1xf32>
      %168 = arith.extf %166 : vector<1x128xbf16> to vector<1x128xf32>
      %169 = vector.broadcast %167 : vector<16x1xf32> to vector<16x128xf32>
      %170 = vector.broadcast %168 : vector<1x128xf32> to vector<16x128xf32>
      %171 = arith.mulf %169, %170 : vector<16x128xf32>
      %172 = arith.addf %163, %171 : vector<16x128xf32>
      %173 = vector.extract_strided_slice %21 {offsets = [2, 0], sizes = [16, 1], strides = [1, 1]} : vector<18x1xbf16> to vector<16x1xbf16>
      %c8_63 = arith.constant 8 : index
      %c0_64 = arith.constant 0 : index
      %c0_65 = arith.constant 0 : index
      %174 = vector.load %arg2[%c8_63, %c0_64, %c0_65] : memref<9x1x128xbf16, #tpu.memory_space<vmem>>, vector<1x1x128xbf16>
      %175 = vector.shape_cast %174 : vector<1x1x128xbf16> to vector<1x128xbf16>
      %176 = arith.extf %173 : vector<16x1xbf16> to vector<16x1xf32>
      %177 = arith.extf %175 : vector<1x128xbf16> to vector<1x128xf32>
      %178 = vector.broadcast %176 : vector<16x1xf32> to vector<16x128xf32>
      %179 = vector.broadcast %177 : vector<1x128xf32> to vector<16x128xf32>
      %180 = arith.mulf %178, %179 : vector<16x128xf32>
      %181 = arith.addf %172, %180 : vector<16x128xf32>
      %182 = arith.maximumf %101, %181 : vector<16x128xf32>
      %c0_66 = arith.constant 0 : index
      %c0_67 = arith.constant 0 : index
      %183 = vector.load %arg5[%c0_66, %c0_67] : memref<16x128xf32, #tpu.memory_space<vmem>>, vector<16x128xf32>
      tpu.vector_store %arg5[%c0_66, %c0_67], %182 {strides = array<i32>} : memref<16x128xf32, #tpu.memory_space<vmem>>, vector<16x128xf32>,
      %c0_68 = arith.constant 0 : index
      %c0_69 = arith.constant 0 : index
      %184 = tpu.strided_load %arg5[%c0_68, %c0_69] {strides = array<i32: 2, 1>} : memref<16x128xf32, #tpu.memory_space<vmem>>, vector<8x128xf32>
      %c1_70 = arith.constant 1 : index
      %c0_71 = arith.constant 0 : index
      %185 = tpu.strided_load %arg5[%c1_70, %c0_71] {strides = array<i32: 2, 1>} : memref<16x128xf32, #tpu.memory_space<vmem>>, vector<8x128xf32>
      %186 = arith.maximumf %184, %185 : vector<8x128xf32>
      %187 = vector.broadcast %0 : vector<1x128xf32> to vector<8x128xf32>
      %188 = arith.addf %186, %187 : vector<8x128xf32>
      %cst = arith.constant 0.000000e+00 : f32
      %189 = vector.broadcast %cst : f32 to vector<8x128xf32>
      %190 = arith.maximumf %188, %189 : vector<8x128xf32>
      %191 = arith.truncf %190 : vector<8x128xf32> to vector<8x128xbf16>
      %c0_72 = arith.constant 0 : index
      %192 = arith.index_cast %arg6 : i32 to index
      %c0_73 = arith.constant 0 : index
      %c0_74 = arith.constant 0 : index
      %193 = vector.load %arg4[%c0_72, %192, %c0_73, %c0_74] : memref<1x16x8x128xbf16, #tpu.memory_space<vmem>>, vector<1x1x8x128xbf16>
      %194 = vector.shape_cast %193 : vector<1x1x8x128xbf16> to vector<8x128xbf16>
      %195 = vector.shape_cast %191 : vector<8x128xbf16> to vector<1x1x8x128xbf16>
      tpu.vector_store %arg4[%c0_72, %192, %c0_73, %c0_74], %195 {strides = array<i32>} : memref<1x16x8x128xbf16, #tpu.memory_space<vmem>>, vector<1x1x8x128xbf16>,
    }
    %c16_i32_1 = arith.constant 16 : i32
    return
  }
  func.func @transform_0(%arg0: i32) -> (i32, i32, i32, i32) {
    %c0_i32 = arith.constant 0 : i32
    %c0_i32_0 = arith.constant 0 : i32
    %c0_i32_1 = arith.constant 0 : i32
    %c0_i32_2 = arith.constant 0 : i32
    return %arg0, %c0_i32, %c0_i32_0, %c0_i32_1 : i32, i32, i32, i32
  }
  func.func @transform_1(%arg0: i32) -> (i32, i32, i32) {
    %c0_i32 = arith.constant 0 : i32
    %c0_i32_0 = arith.constant 0 : i32
    %c0_i32_1 = arith.constant 0 : i32
    %c0_i32_2 = arith.constant 0 : i32
    return %c0_i32, %c0_i32_0, %c0_i32_1 : i32, i32, i32
  }
  func.func @transform_2(%arg0: i32) -> (i32, i32) {
    %c0_i32 = arith.constant 0 : i32
    %c0_i32_0 = arith.constant 0 : i32
    %c0_i32_1 = arith.constant 0 : i32
    return %c0_i32, %c0_i32_0 : i32, i32
  }
  func.func @transform_3(%arg0: i32) -> (i32, i32, i32, i32) {
    %c0_i32 = arith.constant 0 : i32
    %c0_i32_0 = arith.constant 0 : i32
    %c0_i32_1 = arith.constant 0 : i32
    %c0_i32_2 = arith.constant 0 : i32
    return %arg0, %c0_i32, %c0_i32_0, %c0_i32_1 : i32, i32, i32, i32
  }
}

</mosaic_0001>

<bundles_post_ra>
// kernel: tpu_custom_call.1
= control target key start
LH: loop header
LB: loop body
LE: loop exit
PB: predicated region body
PF: predicated region fallthrough
CT: control target
= control target key end

     0   :  { %8 = vsyncpa [#allocation4], 0  ;;  %s1214_s0 = inlined_call_operand.vmem [shape: bf16[2,34,18,1], index: 0, kind: input, shape index: {}]   ;;  %s1215_s1 = inlined_call_operand.vmem [shape: bf16[9,1,128], index: 1, kind: input, shape index: {}]   ;;  %s1216_s2 = inlined_call_operand.vmem [shape: f32[1,128], index: 2, kind: input, shape index: {}]   ;;  %s1217_s3 = inlined_call_operand.hbm [shape: bf16[2,16,8,128], index: 3, kind: output, shape index: {}]  }
   0x1   :  { %10 = vsyncpa [#allocation4 + $0x1], 0  ;;  %s879_s12 = smov 0   ;;  %s881_s13 = smov 0  }
   0x2   :  { %s883_s14 = smov 0   ;;  %s885_s15 = smov 0  }
   0x3 LB: > { %s900_s16 = sadd.s32 4294967295, %s849_s15   ;;  %s657_s17 = sadd.s32 4294967294, %s849_s15   ;;  %s849_s15 = sphi %s885_s15, %s1223_s15   ;;  %s845_s14 = sphi %s883_s14, %s1222_s14   ;;  %s841_s13 = sphi %s881_s13, %s1221_s13   ;;  %s837_s12 = sphi %s879_s12, %s1220_s12  }
   0x4   : > { %s904_s18 = sadd.s32 1, %s849_s15   ;;  %s91_s19 = sadd.s32 1, %s845_s14 }
   0x5   : > { %s88_s20 = ssub.s32 %s849_s15, %s904_s18  ;;  %p101_p0 = scmp.ne.s32.totalorder %s845_s14, %s841_s13 }
   0x6   : > { %p89_p1 = scmp.eq.s32.totalorder %s88_s20, 0  ;;  %p102_p2 = scmp.eq.s32.totalorder %s900_s16, 1 }
   0x7   : > { %p107_p3 = scmp.ne.s32.totalorder %s841_s13, %s837_s12  ;;  %p108_p4 = scmp.eq.s32.totalorder %s657_s17, 1 }
   0x8   : > { %s915_s21 = scalar_select %p89_p1, %s845_s14, %s91_s19  }
   0x9   : > { %p917_p5 = por %p102_p2, %p101_p0  ;;  %p921_p6 = por %p108_p4, %p107_p3 }
   0xa   : > { %p660_p7 = scmp.ge.s32.totalorder %s849_s15, 1  ;;  %p140_p8 = scmp.lt.s32.totalorder %s849_s15, 3 }
   0xc   : > { %p141_p9 = pnand %p660_p7, %p140_p8 }
   0xd   : > { %s161_s24 = sand.u32 (!%p141_p9), 1, %s841_s13   ;;  %p164_p10 = scmp.lt.s32.totalorder (!%p141_p9), %s900_s16, 1 }
   0xe   : > { %144 = sbr.rel (%p141_p9) target bundleno = 232 (0xe8), region = 32  ;;  %s936_s27 = sshll.u32 (!%p141_p9), %s161_s24, 6 }
   0xf   : > { %s163_s6 = scalar_lea.vmem (!%p141_p9), [#allocation3], %s936_s27  ;;  %s945_s7 = smov (!%p141_p9), 0  }
  0x13   : > { %v932_v0 = vld [vmem:[%s1216_s2] ss:$0 sm:$0xff]  ;;  %s165_s28 = scalar_select %p164_p10, %s900_s16, 1 }
  0x15   : > { %s707_s29 = smul.u32 408, %s165_s28 }
  0x17   : > { %s942_s5 = scalar_lea.vmem %s1214_s0, %s707_s29 }
  0x18 LB: >> { %v855_v1 = vmov 0   ;;  %s696_s8 = smul.u32 24, %s853_s7  ;;  %v218_v27 = vlaneseq  ;;  %v685_v29 = vld [vmem:[%s1215_s1 + $0x5] sm:$0x1]  ;;  %v681_v30 = vld [vmem:[%s1215_s1 + $0x1] sm:$0x1]  ;;  %s853_s7 = sphi %s945_s7, %s175_s7  }
  0x19   : >> { %769 = vset.pattern.permute.xlu1 %v855_v1  ;;  %758 = vset.pattern.permute.xlu0 %v855_v1  ;;  %v684_v31 = vld [vmem:[%s1215_s1 + $0x4] sm:$0x1]  ;;  %v329_v32 = vunpack.c.l.bf16 %v685_v29  ;;  %v227_v34 = vunpack.c.l.bf16 %v681_v30  ;;  %v682_v35 = vld [vmem:[%s1215_s1 + $0x2] sm:$0x1]  ;;  %v204_v36 = vld [vmem:[%s1215_s1] sm:$0x1] }
  0x1a   : >> { %s179_s9 = scalar_lea.vmem %s942_s5, %s696_s8  ;;  %v219_v28 = vshrl.u32 %v218_v27, 7  ;;  %v687_v37 = vld [vmem:[%s1215_s1 + $0x7] sm:$0x1]  ;;  %v688_v38 = vld [vmem:[%s1215_s1 + $0x8] sm:$0x1]  ;;  %v302_v39 = vunpack.c.l.bf16 %v684_v31  ;;  %v255_v42 = vunpack.c.l.bf16 %v682_v35  ;;  %v207_v46 = vunpack.c.l.bf16 %v204_v36  ;;  %s690_s25 = sshll.u32 %s853_s7, 2 }
  0x1b   : >> { %v669_v2 = vld [vmem:[%s179_s9 + $0xc] sm:$0xff]   ;;  %v670_v3 = vld [vmem:[%s179_s9 + $0x14] sm:$0x1]  ;;  %v699_v4 = vld [vmem:[%s179_s9] sm:$0xff]   ;;  %v375_v48 = vunpack.c.l.bf16 %v687_v37  ;;  %v402_v49 = vunpack.c.l.bf16 %v688_v38  ;;  %vm243_vm0 = vcmask 1046528   ;;  %vm266_vm1 = vcmask 1045504   ;;  %s558_s26 = scalar_lea.vmem %s163_s6, %s690_s25 [#allocation3] }
  0x1c   : >> { %v279_v5 = vunpack.c.h.bf16 %v669_v2  ;;  %v301_v6 = vunpack.c.l.bf16 %v670_v3  ;;  %v700_v7 = vunpack.c.l.bf16 %v699_v4  ;;  %v701_v8 = vunpack.c.h.bf16 %v699_v4  ;;  %v706_v9 = vld [vmem:[%s179_s9 + $0x18] sm:$0xff]   ;;  %v182_v10 = vld [vmem:[%s179_s9 + $0x8] sm:$0x1]  ;;  %v675_v22 = vld [vmem:[%s179_s9 + $0x20] sm:$0x1]  ;;  %s175_s7 = sadd.s32 1, %s853_s7  }
  0x1d   : >> { %v704_v11 = vunpack.c.l.bf16 %v706_v9  ;;  %v705_v12 = vunpack.c.h.bf16 %v706_v9  ;;  %v226_v13 = vunpack.c.l.bf16 %v182_v10  ;;  %v278_v14 = vunpack.c.l.bf16 %v669_v2  ;;  %v678_v15 = vld [vmem:[%s179_s9 + $0x24] sm:$0xff]   ;;  %v680_v25 = vld [vmem:[%s179_s9 + $0x2c] sm:$0x1]  ;;  %v683_v40 = vld [vmem:[%s1215_s1 + $0x3] sm:$0x1]  ;;  %p172_p11 = scmp.ge.s32.totalorder %s175_s7, 16  }
  0x1e   : >> { %v770_v16 = vpack.i.bf16 %v301_v6, %v279_v5  ;;  %v759_v17 = vpack.i.bf16 %v701_v8, %v700_v7  ;;  %v488_v20 = vunpack.c.l.bf16 %v678_v15  ;;  %v489_v21 = vunpack.c.h.bf16 %v678_v15  ;;  %v686_v41 = vld [vmem:[%s1215_s1 + $0x6] sm:$0x1]  ;;  %s697_s28 = sshll.u32 (%p172_p11), %s900_s16, 10  ;;  %s574_s8 = sshll.u32 (%p172_p11), %s163_s6, 4  ;;  %s1170_s8 = int_to_ptr.vmem [resolvable:$true] %s574_s8 }
  0x1f   : >> { %v775_v18 = vpack.i.bf16 %v705_v12, %v704_v11  ;;  %v764_v19 = vpack.i.bf16 %v278_v14, %v226_v13  ;;  %v374_v24 = vunpack.c.l.bf16 %v675_v22  ;;  %v504_v26 = vunpack.c.l.bf16 %v680_v25  ;;  %s1166_s4 = scalar_lea.hbm (%p172_p11), %s1217_s3, %s697_s28  ;;  %s1174_s7 = scalar_lea.sflag (%p172_p11), [#allocation4], %s161_s24 }
  0x20   : >> { %771 = vperm.xlu1 %769, %v770_v16   ;;  %760 = vperm.xlu0 %758, %v759_v17   ;;  %v780_v23 = vpack.i.bf16 %v489_v21, %v488_v20  ;;  %v220_v33 = vsub.s32 0, %v219_v28  ;;  %v280_v52 = vunpack.c.l.bf16 %v683_v40  ;;  %v353_v53 = vunpack.c.l.bf16 %v686_v41  ;;  %s785_s5 = scalar_lea.vmem (%p172_p11), %s1170_s8, 1024  ;;  %s856_s16 = smov (%p172_p11), [#allocation3]  }
  0x21   : > { %p786_p12 = scmp.ne.s32.totalorder (%p172_p11), %s1170_s8, %s785_s5  ;;  %s789_s9 = sshll.u32 (%p172_p11), %s856_s16, 4  ;;  %s790_s9 = int_to_ptr.vmem [resolvable:$false] %s789_s9 }
  0x22   : >> { %v979_v43 = vrot.slane %v329_v32, %v220_v33  ;;  %v981_v44 = vrot.slane %v227_v34, %v220_v33  ;;  %v985_v54 = vrot.slane %v302_v39, %v220_v33  ;;  %v987_v56 = vrot.slane %v255_v42, %v220_v33  ;;  %s791_s10 = scalar_lea.vmem (%p172_p11), %s790_s9, 2048  ;;  %p792_p1 = scmp.lt.s32.totalorder (%p172_p11), %s1170_s8, %s790_s9 }
  0x23   : >> { %v999_v62 = vrot.slane %v207_v46, %v220_v33  ;;  %v1001_v63 = vrot.slane %v375_v48, %v220_v33  ;;  %v1003_v1 = vrot.slane %v402_v49, %v220_v33  ;;  %v1005_v2 = vrot.slane %v280_v52, %v220_v33  ;;  %p787_p13 = pnand (%p172_p11), %p786_p12, %p917_p5  ;;  %p793_p2 = scmp.lt.s32.totalorder (%p172_p11), %s791_s10, %s785_s5 }
  0x24   : >> { %776 = vperm.xlu1 %769, %v775_v18   ;;  %765 = vperm.xlu0 %758, %v764_v19   ;;  %v1007_v3 = vrot.slane %v353_v53, %v220_v33 }
  0x25   : > { %p788_p0 = pneg (%p172_p11), %p787_p13  ;;  %p794_p3 = por (%p172_p11), %p793_p2, %p792_p1 }
  0x27   : > { %p795_p4 = pnand (%p172_p11), %p794_p3, %p788_p0 }
  0x28   : >> { %781 = vperm.xlu1 %769, %v780_v23   ;;  %378 = vperm.xlu0 %758, %v374_v24  }
  0x2c   : >> { %507 = vperm.xlu0 %758, %v504_v26  }
  0x9b   : >> { %v772_v45 = vpop.permute.xlu1 %771  ;;  %v761_v47 = vpop.permute.xlu0 %760 }
  0x9c   : >> { %v774_v50 = vunpack.i.h.bf16 %v772_v45  ;;  %v983_v51 = vunpack.i.l.bf16 %v772_v45  ;;  %v763_v55 = vunpack.i.h.bf16 %v761_v47  ;;  %v762_v58 = vunpack.i.l.bf16 %v761_v47 }
  0x9e   : >> { %v336_v57 = vmul.f32 %v774_v50, %v979_v43  ;;  %v426_v59 = vmul.f32 %v774_v50, %v981_v44  ;;  %v993_v60 = vmul.f32 %v983_v51, %v979_v43  ;;  %v997_v61 = vmul.f32 %v983_v51, %v981_v44 }
  0x9f   : >> { %v1010_v4 = vmul.f32 %v774_v50, %v985_v54  ;;  %v441_v5 = vmul.f32 %v774_v50, %v987_v56  ;;  %v1015_v6 = vmul.f32 %v983_v51, %v987_v56  ;;  %v1018_v7 = vmul.f32 %v763_v55, %v981_v44  ;;  %v777_v8 = vpop.permute.xlu1 %776  ;;  %v766_v13 = vpop.permute.xlu0 %765 }
  0xa0   : >> { %v343_v9 = vrot.slane %v336_v57, 2  ;;  %v1021_v10 = vmul.f32 %v763_v55, %v987_v56  ;;  %v237_v11 = vmul.f32 %v762_v58, %v981_v44  ;;  %v260_v12 = vmul.f32 %v762_v58, %v987_v56 }
  0xa1   : >> { %v433_v14 = vrot.slane %v426_v59, 1  ;;  %v341_v15 = vrot.slane %v993_v60, 2  ;;  %v431_v16 = vrot.slane %v997_v61, 1  ;;  %v245_v17 = vrot.slane %v1018_v7, 1 }
  0xa2   : >> { %v268_v18 = vrot.slane %v1021_v10, 2  ;;  %v244_v19 = vrot.slane %v237_v11, 1  ;;  %v267_v20 = vrot.slane %v260_v12, 2  ;;  %v1029_v21 = vunpack.i.h.bf16 %v777_v8 }
  0xa3   : >> { %v222_v22 = vmul.f32 %v762_v58, %v999_v62  ;;  %v1032_v23 = vunpack.i.l.bf16 %v777_v8  ;;  %v1036_v24 = vmul.f32 %v983_v51, %v985_v54  ;;  %v768_v25 = vunpack.i.h.bf16 %v766_v13  ;;  %v782_v42 = vpop.permute.xlu1 %781 }
  0xa4   : >> { %v321_v26 = vrot.slane %v1010_v4, 1  ;;  %v448_v27 = vrot.slane %v441_v5, 2  ;;  %v223_v28 = vmul.f32 %v763_v55, %v999_v62  ;;  %v246_v29 = vsel %vm243_vm0, %v244_v19, %v245_v17 }
  0xa5   : >> { %v1042_v30 = vsel %vm266_vm1, %v341_v15, %v343_v9  ;;  %v1045_v31 = vsel %vm243_vm0, %v431_v16, %v433_v14  ;;  %v446_v32 = vrot.slane %v1015_v6, 2  ;;  %v251_v33 = vadd.f32 %v246_v29, %v222_v22 }
  0xa6   : >> { %v269_v34 = vsel %vm266_vm1, %v267_v20, %v268_v18  ;;  %v1051_v35 = vmul.f32 %v1029_v21, %v1001_v63  ;;  %v1055_v36 = vmul.f32 %v1029_v21, %v1003_v1  ;;  %v312_v37 = vmul.f32 %v768_v25, %v985_v54 }
  0xa7   : >> { %v274_v38 = vadd.f32 %v269_v34, %v251_v33  ;;  %v385_v39 = vmul.f32 %v1032_v23, %v1001_v63  ;;  %v319_v40 = vrot.slane %v1036_v24, 1  ;;  %v295_v41 = vmul.f32 %v768_v25, %v1005_v2 }
  0xa8   : >> { %v318_v45 = vrot.slane %v312_v37, 1  ;;  %v334_v46 = vmul.f32 %v768_v25, %v979_v43  ;;  %v424_v47 = vmul.f32 %v768_v25, %v981_v44  ;;  %v439_v48 = vmul.f32 %v768_v25, %v987_v56 }
  0xa9   : >> { %v1066_v49 = vsel %vm266_vm1, %v446_v32, %v448_v27  ;;  %v1070_v50 = vmul.f32 %v1032_v23, %v1003_v1  ;;  %v767_v52 = vunpack.i.l.bf16 %v766_v13  ;;  %v297_v53 = vadd.f32 %v295_v41, %v274_v38 }
  0xaa   : >> { %v392_v55 = vrot.slane %v1051_v35, 1  ;;  %v296_v57 = vmul.f32 %v983_v51, %v1005_v2  ;;  %v340_v58 = vrot.slane %v334_v46, 2  ;;  %v1075_v59 = vunpack.i.h.bf16 %v782_v42 }
  0xab   : >> { %v320_v60 = vsel %vm243_vm0, %v318_v45, %v319_v40  ;;  %v430_v61 = vrot.slane %v424_v47, 1  ;;  %v239_v5 = vmul.f32 %v767_v52, %v981_v44  ;;  %v262_v6 = vmul.f32 %v767_v52, %v987_v56 }
  0xac   : >> { %v414_v7 = vrot.slane %v1055_v36, 2  ;;  %v391_v8 = vrot.slane %v385_v39, 1  ;;  %v445_v9 = vrot.slane %v439_v48, 2  ;;  %v325_v10 = vadd.f32 %v320_v60, %v297_v53 }
  0xad   : >> { %v413_v11 = vrot.slane %v1070_v50, 2  ;;  %v247_v12 = vrot.slane %v239_v5, 1  ;;  %v270_v13 = vrot.slane %v262_v6, 2  ;;  %v342_v14 = vsel %vm266_vm1, %v340_v58, %v341_v15 }
  0xae   : >> { %v1085_v19 = vmul.f32 %v1075_v59, %v1001_v63  ;;  %v783_v20 = vunpack.i.l.bf16 %v782_v42  ;;  %v347_v22 = vadd.f32 %v342_v14, %v325_v10  ;;  %v422_v44 = vmul.f32 %v768_v25, %v999_v62  ;;  %v379_v42 = vpop.permute.xlu0 %378 }
  0xaf   : >> { %v248_v56 = vsel %vm243_vm0, %v245_v17, %v247_v12  ;;  %v1091_v24 = vmul.f32 %v1075_v59, %v1003_v1  ;;  %v368_v27 = vmul.f32 %v1032_v23, %v1007_v3  ;;  %v432_v29 = vsel %vm243_vm0, %v430_v61, %v431_v16 }
  0xb0   : >> { %v252_v15 = vadd.f32 %v248_v56, %v223_v28  ;;  %v271_v33 = vsel %vm266_vm1, %v268_v18, %v270_v13  ;;  %v437_v34 = vadd.f32 %v432_v29, %v422_v44  ;;  %v447_v37 = vsel %vm266_vm1, %v445_v9, %v446_v32 }
  0xb1   : >> { %v458_v25 = vmul.f32 %v1032_v23, %v985_v54  ;;  %v459_v17 = vmul.f32 %v1029_v21, %v985_v54  ;;  %v473_v38 = vmul.f32 %v1032_v23, %v979_v43  ;;  %v474_v39 = vmul.f32 %v1029_v21, %v979_v43 }
  0xb2   : >> { %v275_v41 = vadd.f32 %v271_v33, %v252_v15  ;;  %v370_v16 = vadd.f32 %v368_v27, %v347_v22  ;;  %v452_v28 = vadd.f32 %v447_v37, %v437_v34  ;;  %v454_v18 = vmul.f32 %v1032_v23, %v1005_v2  ;;  %v508_v22 = vpop.permute.xlu0 %507 }
  0xb3   : >> { %v464_v32 = vrot.slane %v458_v25, 1  ;;  %v465_v45 = vrot.slane %v459_v17, 1  ;;  %v479_v46 = vrot.slane %v473_v38, 2  ;;  %v480_v47 = vrot.slane %v474_v39, 2 }
  0xb4   : >> { %v322_v48 = vsel %vm243_vm0, %v319_v40, %v321_v26  ;;  %v298_v52 = vadd.f32 %v296_v57, %v275_v41  ;;  %v456_v53 = vadd.f32 %v454_v18, %v452_v28  ;;  %v510_v58 = vmul.f32 %v783_v20, %v1001_v63 }
  0xb5   : >> { %v517_v60 = vrot.slane %v1085_v19, 1  ;;  %v393_v61 = vsel %vm243_vm0, %v391_v8, %v392_v55  ;;  %v466_v23 = vsel %vm243_vm0, %v464_v32, %v465_v45  ;;  %v525_v5 = vmul.f32 %v783_v20, %v1003_v1 }
  0xb6   : >> { %v326_v6 = vadd.f32 %v322_v48, %v298_v52  ;;  %v532_v9 = vrot.slane %v1091_v24, 2  ;;  %v471_v4 = vadd.f32 %v466_v23, %v456_v53  ;;  %v423_v26 = vmul.f32 %v983_v51, %v999_v62 }
  0xb7   : >> { %v398_v40 = vadd.f32 %v393_v61, %v370_v16  ;;  %v481_v57 = vsel %vm266_vm1, %v479_v46, %v480_v47  ;;  %v516_v10 = vrot.slane %v510_v58, 1  ;;  %v387_v12 = vmul.f32 %v1001_v63, %v379_v42 }
  0xb8   : >> { %v486_v13 = vadd.f32 %v481_v57, %v471_v4  ;;  %v500_v8 = vmul.f32 %v783_v20, %v1007_v3  ;;  %v438_v14 = vadd.f32 %v1045_v31, %v423_v26  ;;  %v348_v19 = vadd.f32 %v1042_v30, %v326_v6 }
  0xb9   : >> { %v531_v44 = vrot.slane %v525_v5, 2  ;;  %v369_v56 = vmul.f32 %v1029_v21, %v1007_v3  ;;  %v455_v51 = vmul.f32 %v1029_v21, %v1005_v2  ;;  %v460_v62 = vmul.f32 %v379_v42, %v985_v54 }
  0xba   : >> { %v502_v24 = vadd.f32 %v500_v8, %v486_v13  ;;  %v453_v27 = vadd.f32 %v1066_v49, %v438_v14  ;;  %v409_v29 = vmul.f32 %v1003_v1, %v379_v42  ;;  %v475_v20 = vmul.f32 %v379_v42, %v979_v43 }
  0xbb   : >> { %v518_v31 = vsel %vm243_vm0, %v516_v10, %v517_v60  ;;  %v394_v30 = vrot.slane %v387_v12, 1  ;;  %v467_v15 = vrot.slane %v460_v62, 1  ;;  %v512_v33 = vmul.f32 %v508_v22, %v1001_v63 }
  0xbc   : >> { %v523_v34 = vadd.f32 %v518_v31, %v502_v24  ;;  %v457_v37 = vadd.f32 %v455_v51, %v453_v27  ;;  %v371_v25 = vadd.f32 %v369_v56, %v348_v19  ;;  %v482_v17 = vrot.slane %v475_v20, 2 }
  0xbd   : >> { %v415_v54 = vsel %vm266_vm1, %v413_v11, %v414_v7  ;;  %v533_v2 = vsel %vm266_vm1, %v531_v44, %v532_v9  ;;  %v468_v43 = vsel %vm243_vm0, %v465_v45, %v467_v15  ;;  %v527_v21 = vmul.f32 %v508_v22, %v1003_v1 }
  0xbe   : >> { %v420_v49 = vadd.f32 %v415_v54, %v398_v40  ;;  %v538_v38 = vadd.f32 %v533_v2, %v523_v34  ;;  %v472_v39 = vadd.f32 %v468_v43, %v457_v37  ;;  %v395_v63 = vsel %vm243_vm0, %v392_v55, %v394_v30 }
  0xbf   : >> { %v416_v41 = vrot.slane %v409_v29, 2  ;;  %v483_v16 = vsel %vm266_vm1, %v480_v47, %v482_v17  ;;  %v519_v28 = vrot.slane %v512_v33, 1  ;;  %v501_v50 = vmul.f32 %v1075_v59, %v1007_v3 }
  0xc0   : >> { %v540_v11 = vmax.f32 %v420_v49, %v538_v38  ;;  %v399_v18 = vadd.f32 %v395_v63, %v371_v25  ;;  %v487_v42 = vadd.f32 %v483_v16, %v472_v39  ;;  %v534_v32 = vrot.slane %v527_v21, 2 }
  0xc1   : >> { %v417_v35 = vsel %vm266_vm1, %v414_v7, %v416_v41  ;;  %v520_v55 = vsel %vm243_vm0, %v517_v60, %v519_v28 }
  0xc2   : >> { %542 = vst [vmem:[#allocation2] sm:$0xff] %v540_v11  ;;  %v503_v1 = vadd.f32 %v501_v50, %v487_v42  ;;  %v421_v45 = vadd.f32 %v417_v35, %v399_v18  ;;  %v535_v47 = vsel %vm266_vm1, %v532_v9, %v534_v32 }
  0xc4   : >> { %v524_v46 = vadd.f32 %v520_v55, %v503_v1 }
  0xc6   : >> { %v539_v48 = vadd.f32 %v535_v47, %v524_v46 }
  0xc8   : >> { %v541_v3 = vmax.f32 %v421_v45, %v539_v48 }
  0xca   : >> { %543 = vst [vmem:[#allocation2 + $0x8] sm:$0xff] %v541_v3 }
  0xd1   : >> { %v544_v59 = vld [vmem:[#allocation2] ss:$2 sm:$0xff]  ;;  %v546_v52 = vld [vmem:[#allocation2 + $0x1] ss:$2 sm:$0xff] }
  0xd2   : >> { %v547_v53 = vmax.f32 %v544_v59, %v546_v52 }
  0xd4   : >> { %v554_v58 = vadd.f32 %v932_v0, %v547_v53 }
  0xd6   : >> { %v555_v61 = vmax.f32 %v554_v58, 0.0  ;;  %174 = sbr.rel (!%p172_p11) target bundleno = 24 (0x18), region = 88 }
  0xd8   : >> { %v556_v36 = vpack.c.bf16 %v555_v61, %v555_v61 }
  0xda   : >> { %559 = vst [vmem:[%s558_s26] sm:$0xf] %v556_v36 }
  0xdb   : > { %798 = shalt.err (!%p795_p4)
}
  0xdc   : > { %s799_s24 = scalar_lea.hbm %s1166_s4, 1024  ;;  %s803_s11 = scalar_lea.hbm %s1217_s3, 2048 }
  0xdd   : > { %p800_p7 = scmp.ne.s32.totalorder %s1166_s4, %s799_s24  ;;  %p804_p10 = scmp.lt.s32.totalorder %s1166_s4, %s1217_s3 }
  0xde   : > { %p805_p11 = scmp.lt.s32.totalorder %s803_s11, %s799_s24 }
  0xdf   : > { %p801_p8 = pnand %p800_p7, %p917_p5 }
  0xe0   : > { %p806_p12 = por %p805_p11, %p804_p10 }
  0xe1   : > { %p802_p9 = pneg %p801_p8 }
  0xe3   : > { %p807_p13 = pnand %p806_p12, %p802_p9 }
  0xe5   : > { %810 = shalt.err (!%p807_p13)
}
  0xe6   : > { %s857_s20 = smov 64   ;;  %s858_s25 = smov 4  }
  0xe7   : > { %708 = dma.vmem_to_hbm [thread:$0]  (%p917_p5), %s1170_s8, 1024, %s1166_s4, %s1174_s7, %s857_s20, %s857_s20, %s858_s25  }
  0xe8 PF: > { %p714_p0 = scmp.ge.s32.totalorder %s849_s15, 2  ;;  %s589_s26 = sand.u32 1, %s837_s12  }
  0xe9   : > { %s590_s28 = scalar_lea.sflag [#allocation4], %s589_s26 }
  0xea   : > { %p711_p1 = pnand %p714_p0, %p921_p6 }
  0xec   : > { %p712_p2 = pneg %p711_p1 }
  0xee   : > { %832 = dma.done.wait (%p712_p2), %s590_s28, 1024  }
  0xef   : > { %834 = vsyncadd (%p712_p2), %s590_s28, 4294966272  ;;  %p13_p3 = scmp.ge.s32.totalorder %s904_s18, 4   ;;  %s1220_s12 = smov %s841_s13 }
  0xf0   : > { %s1221_s13 = smov %s845_s14  ;;  %s1222_s14 = smov %s915_s21 }
  0xf1   : > { %s1223_s15 = smov %s904_s18  ;;  %15 = sbr.rel (!%p13_p3) target bundleno = 3 (0x3), region = 99 }
  0xf6   :  { %595 = vsyncpa [#allocation4], 1 }
  0xf7   :  { %597 = vsyncpa [#allocation4 + $0x1], 1 }

</bundles_post_ra>
